<compile_context>
chip_gen: v5e
topology: v5e:2x2
jax: 0.10.0
libtpu: 0.0.40
codegen_flags: <defaults>
</compile_context>

<pallas_src>
import functools

import jax
import jax.numpy as jnp
from jax.experimental import pallas as pl
from jax.experimental.pallas import tpu as pltpu


def _taps_matmul(w_flat, x0, x1, x2, c):
    """sum_k W_k @ X_k with the 3 conv taps merged into one K=3c MXU matmul.

    w_flat: (Cout, 3c) with column blocks [W_0 | W_1 | W_2]; x_k: (c, Wd) shifted operands.
    Falls back to three matmuls when c is not sublane-aligned (8), where the im2col concat
    would force a misaligned relayout.
    """
    if c % 8 == 0:
        xcat = jnp.concatenate([x0, x1, x2], axis=0)                     # (3c, Wd)
        return jnp.dot(w_flat, xcat, preferred_element_type=jnp.float32)
    y = jnp.dot(w_flat[:, 0 * c:1 * c], x0, preferred_element_type=jnp.float32)
    y = y + jnp.dot(w_flat[:, 1 * c:2 * c], x1, preferred_element_type=jnp.float32)
    y = y + jnp.dot(w_flat[:, 2 * c:3 * c], x2, preferred_element_type=jnp.float32)
    return y


def _fused_convblock_kernel(xa_ref, xb_ref, w1_ref, b1_ref, w2_ref, b2_ref, o_ref,
                            *, t, length, negative_slope, epsilon, use_pn):
    """Both ConvBlock stages for one (batch, length-tile) grid step.

    xa_ref: (Cin, T)      main input block (padded coords [j*T, j*T+T))
    xb_ref: (Cin, 128)    lane-aligned right-halo block (next 128 padded columns)
    w1_ref: (Cout, 3*Cin) scale-folded stage-1 taps, flattened [W0|W1|W2]
    w2_ref: (Cout, 3*Cout) scale-folded stage-2 taps
    b1_ref/b2_ref: (Cout, 1) f32 biases
    o_ref:  (Cout, T)     output tile (original columns [j*T, j*T+T))
    """
    cin = xa_ref.shape[0]
    cout = o_ref.shape[0]
    wd = t + 128
    j = pl.program_id(1)

    # (Cin, T+128) window.  Padded column j*T + p corresponds to original x position
    # j*T + p - 2, so the window carries the 2-column left halo needed by two conv stages.
    win = jnp.concatenate([xa_ref[...], xb_ref[...]], axis=-1)

    # Shift-left-by-1 / -by-2 tap operands via XLU rolls (wrap-around only pollutes the
    # last two window columns, which are never read by the T output columns we store).
    win1 = pltpu.roll(win, shift=wd - 1, axis=1)
    win2 = pltpu.roll(win, shift=wd - 2, axis=1)

    # ---- Stage 1: conv (scale folded) + bias + LeakyReLU (+ PixelNorm), f32 accumulate.
    # h column p corresponds to original position j*T + p - 1.
    h = _taps_matmul(w1_ref[...], win, win1, win2, cin)                  # (Cout, Wd) f32
    h = h + b1_ref[...]
    h = jnp.maximum(h, negative_slope * h)                               # LeakyReLU(0.2)
    if use_pn:
        h = h * jax.lax.rsqrt(jnp.mean(h * h, axis=0, keepdims=True) + epsilon)

    # Zero h outside [0, L): stage 2 must see Conv1d's zero padding at positions -1 and >= L,
    # and this also kills any right-pad / roll-wrap garbage before it can reach real outputs.
    pos = jax.lax.broadcasted_iota(jnp.int32, (1, wd), 1) + (j * t - 1)
    h = jnp.where((pos >= 0) & (pos < length), h, 0.0)

    # ---- Stage 2 on the in-register h (the intermediate never goes to HBM).
    h0 = h.astype(xa_ref.dtype)
    h1 = pltpu.roll(h0, shift=wd - 1, axis=1)
    h2 = pltpu.roll(h0, shift=wd - 2, axis=1)
    y = _taps_matmul(w2_ref[...], h0, h1, h2, cout)                      # (Cout, Wd) f32
    y = y + b2_ref[...]
    y = jnp.maximum(y, negative_slope * y)
    if use_pn:
        y = y * jax.lax.rsqrt(jnp.mean(y * y, axis=0, keepdims=True) + epsilon)

    # Lane-aligned prefix: output column q is original position j*T + q.
    o_ref[...] = y[:, :t].astype(o_ref.dtype)


def _ceil_to(v, m):
    return ((v + m - 1) // m) * m


def conv_block(x, w1, b1, w2, b2, *, use_pixelnorm=True, gain=2,
               negative_slope=0.2, epsilon=1e-8, lane_tile=1024,
               vmem_limit_bytes=64 * 1024 * 1024):
    """ConvBlock.forward as one fused pallas_call.

    x: (N, C_in, L); w1: (C_out, C_in, 3); b1: (C_out,); w2: (C_out, C_out, 3); b2: (C_out,).
    Returns (N, C_out, L) in x.dtype.
    """
    n, cin, length = x.shape
    cout = w1.shape[0]
    assert w1.shape == (cout, cin, 3) and w2.shape == (cout, cout, 3)
    kernel_size = 3
    scale1 = (gain / (cin * kernel_size)) ** 0.5
    scale2 = (gain / (cout * kernel_size)) ** 0.5

    # Lane tile: multiple of 128 (lane-dense, unmasked stores).  1024 is safe on all
    # generations; raise toward 2048 on v5e/v6e, keep <= 1024 on v7x (64 MiB VMEM).
    lane_tile = max(128, (lane_tile // 128) * 128)
    t = min(lane_tile, _ceil_to(length, 128))
    num_tiles = (length + t - 1) // t
    halo_blk = t // 128

    # Pad: 2 zero columns on the left (two-stage conv halo) and enough on the right so the
    # last tile's T-wide block AND its 128-wide halo block are in range.  No overlapping
    # window copy is materialized; the kernel reads windows straight from x_p.
    p_len = num_tiles * t + 128
    x_p = jnp.pad(x, ((0, 0), (0, 0), (2, p_len - 2 - length)))

    # Fold the weight-standardization scale into the taps and flatten to (Cout, 3*C) so each
    # stage is a single K=3*C matmul against the in-register im2col operand.
    w1_flat = jnp.concatenate([w1[:, :, k] for k in range(3)], axis=1)
    w2_flat = jnp.concatenate([w2[:, :, k] for k in range(3)], axis=1)
    w1_flat = (w1_flat * jnp.asarray(scale1, w1.dtype)).astype(x.dtype)
    w2_flat = (w2_flat * jnp.asarray(scale2, w2.dtype)).astype(x.dtype)
    b1c = b1.astype(jnp.float32).reshape(cout, 1)
    b2c = b2.astype(jnp.float32).reshape(cout, 1)

    kernel = functools.partial(
        _fused_convblock_kernel, t=t, length=length,
        negative_slope=negative_slope, epsilon=epsilon, use_pn=use_pixelnorm)

    out = pl.pallas_call(
        kernel,
        out_shape=jax.ShapeDtypeStruct((n, cout, num_tiles * t), x.dtype),
        grid_spec=pltpu.PrefetchScalarGridSpec(
            num_scalar_prefetch=0,
            grid=(n, num_tiles),
            in_specs=[
                # Main T-wide input block and its lane-aligned 128-wide right-halo block
                # (same padded array passed twice -> overlapping windows, no HBM copy).
                pl.BlockSpec((None, cin, t), lambda i, j: (i, 0, j)),
                pl.BlockSpec((None, cin, 128), lambda i, j: (i, 0, (j + 1) * halo_blk)),
                # Resident (constant-index) weights / biases.
                pl.BlockSpec((cout, 3 * cin), lambda i, j: (0, 0)),
                pl.BlockSpec((cout, 1), lambda i, j: (0, 0)),
                pl.BlockSpec((cout, 3 * cout), lambda i, j: (0, 0)),
                pl.BlockSpec((cout, 1), lambda i, j: (0, 0)),
            ],
            out_specs=pl.BlockSpec((None, cout, t), lambda i, j: (i, 0, j)),
        ),
        compiler_params=pltpu.CompilerParams(
            dimension_semantics=("parallel", "parallel"),
            vmem_limit_bytes=vmem_limit_bytes,
        ),
    )(x_p, x_p, w1_flat, b1c, w2_flat, b2c)

    if out.shape[-1] != length:
        out = out[:, :, :length]
    return out


def _reference_conv_block(x, w1, b1, w2, b2, *, use_pixelnorm=True, gain=2,
                          negative_slope=0.2, epsilon=1e-8):
    """Plain-JAX reference matching the PyTorch module exactly."""
    def ws_conv(v, w, b, scale):
        length = v.shape[-1]
        vp = jnp.pad(v * scale, ((0, 0), (0, 0), (1, 1)))
        y = sum(jnp.einsum('oc,ncl->nol', w[:, :, k], vp[:, :, k:k + length],
                           precision=jax.lax.Precision.HIGHEST)
                for k in range(w.shape[-1]))
        return y + b[None, :, None]

    def lrelu(v):
        return jnp.where(v >= 0, v, negative_slope * v)

    def pn(v):
        return v / jnp.sqrt(jnp.mean(v * v, axis=1, keepdims=True) + epsilon)

    cin, cout = x.shape[1], w1.shape[0]
    h = lrelu(ws_conv(x, w1, b1, (gain / (cin * 3)) ** 0.5))
    if use_pixelnorm:
        h = pn(h)
    h = lrelu(ws_conv(h, w2, b2, (gain / (cout * 3)) ** 0.5))
    if use_pixelnorm:
        h = pn(h)
    return h


if __name__ == "__main__":
    key = jax.random.PRNGKey(0)
    kx, kw1, kb1, kw2, kb2, kx2, kw3, kw4, kb3, kb4 = jax.random.split(key, 10)

    # Small shapes consistent with the module: Conv1d input is (N, C_in, L).
    n, cin, cout, length = 2, 4, 8, 16
    x = jax.random.normal(kx, (n, cin, length), dtype=jnp.float32)
    w1 = jax.random.normal(kw1, (cout, cin, 3), dtype=jnp.float32)
    b1 = 0.1 * jax.random.normal(kb1, (cout,), dtype=jnp.float32)
    w2 = jax.random.normal(kw2, (cout, cout, 3), dtype=jnp.float32)
    b2 = 0.1 * jax.random.normal(kb2, (cout,), dtype=jnp.float32)

    y = jax.block_until_ready(conv_block(x, w1, b1, w2, b2, use_pixelnorm=True))
    y_ref = _reference_conv_block(x, w1, b1, w2, b2, use_pixelnorm=True)
    assert y.shape == (n, cout, length) and y.dtype == x.dtype
    assert jnp.allclose(y, y_ref, atol=1e-4, rtol=1e-4)

    # use_pixelnorm=False path.
    y_np = jax.block_until_ready(conv_block(x, w1, b1, w2, b2, use_pixelnorm=False))
    y_np_ref = _reference_conv_block(x, w1, b1, w2, b2, use_pixelnorm=False)
    assert jnp.allclose(y_np, y_np_ref, atol=1e-4, rtol=1e-4)

    # Multi-tile path: forces several lane tiles (halo blocks + boundary masking exercised);
    # channels are a multiple of 8 so the merged K=3*C single-matmul path runs too.
    n2, c2, l2 = 2, 16, 300
    x2 = jax.random.normal(kx2, (n2, c2, l2), dtype=jnp.float32)
    w3 = jax.random.normal(kw3, (c2, c2, 3), dtype=jnp.float32)
    w4 = jax.random.normal(kw4, (c2, c2, 3), dtype=jnp.float32)
    b3 = 0.1 * jax.random.normal(kb3, (c2,), dtype=jnp.float32)
    b4 = 0.1 * jax.random.normal(kb4, (c2,), dtype=jnp.float32)
    y2 = jax.block_until_ready(
        conv_block(x2, w3, b3, w4, b4, use_pixelnorm=True, lane_tile=128))
    y2_ref = _reference_conv_block(x2, w3, b3, w4, b4, use_pixelnorm=True)
    assert y2.shape == (n2, c2, l2)
    assert jnp.allclose(y2, y2_ref, atol=1e-4, rtol=1e-4)

    print("KERNEL_OK")
</pallas_src>

<mosaic_0001>
module attributes {stable_mosaic.version = 11 : i64} {
  func.func @_fused_convblock_kernel(%arg0: i32, %arg1: i32, %arg2: memref<1x4x128xf32, #tpu.memory_space<vmem>>, %arg3: memref<1x4x128xf32, #tpu.memory_space<vmem>>, %arg4: memref<8x12xf32, #tpu.memory_space<vmem>>, %arg5: memref<8x1xf32, #tpu.memory_space<vmem>>, %arg6: memref<8x24xf32, #tpu.memory_space<vmem>>, %arg7: memref<8x1xf32, #tpu.memory_space<vmem>>, %arg8: memref<1x8x128xf32, #tpu.memory_space<vmem>>) attributes {dimension_semantics = [#tpu.dimension_semantics<parallel>, #tpu.dimension_semantics<parallel>], iteration_bounds = array<i64: 2, 1>, scalar_prefetch = 0 : i64, scratch_operands = 0 : i64, tpu.core_type = #tpu.core_type<tc>, window_params = [{transform_indices = @transform_0, window_bounds = array<i64: 1, 4, 128>}, {transform_indices = @transform_1, window_bounds = array<i64: 1, 4, 128>}, {pipeline_mode = #tpu.pipeline_mode<synchronous>, transform_indices = @transform_2, window_bounds = array<i64: 8, 12>}, {pipeline_mode = #tpu.pipeline_mode<synchronous>, transform_indices = @transform_3, window_bounds = array<i64: 8, 1>}, {pipeline_mode = #tpu.pipeline_mode<synchronous>, transform_indices = @transform_4, window_bounds = array<i64: 8, 24>}, {pipeline_mode = #tpu.pipeline_mode<synchronous>, transform_indices = @transform_5, window_bounds = array<i64: 8, 1>}, {transform_indices = @transform_6, window_bounds = array<i64: 1, 8, 128>}]} {
    %c0 = arith.constant 0 : index
    %c0_0 = arith.constant 0 : index
    %c0_1 = arith.constant 0 : index
    %0 = vector.load %arg2[%c0, %c0_0, %c0_1] : memref<1x4x128xf32, #tpu.memory_space<vmem>>, vector<1x4x128xf32>
    %1 = vector.shape_cast %0 : vector<1x4x128xf32> to vector<4x128xf32>
    %c0_2 = arith.constant 0 : index
    %c0_3 = arith.constant 0 : index
    %c0_4 = arith.constant 0 : index
    %2 = vector.load %arg3[%c0_2, %c0_3, %c0_4] : memref<1x4x128xf32, #tpu.memory_space<vmem>>, vector<1x4x128xf32>
    %3 = vector.shape_cast %2 : vector<1x4x128xf32> to vector<4x128xf32>
    %4 = tpu.concatenate %1, %3 in 1 : vector<4x128xf32>, vector<4x128xf32> -> vector<4x256xf32>
    %c255_i32 = arith.constant 255 : i32
    %5 = tpu.dynamic_rotate %4 by %c255_i32 dim 1 : vector<4x256xf32>, i32 -> vector<4x256xf32>
    %c254_i32 = arith.constant 254 : i32
    %6 = tpu.dynamic_rotate %4 by %c254_i32 dim 1 : vector<4x256xf32>, i32 -> vector<4x256xf32>
    %c0_5 = arith.constant 0 : index
    %c0_6 = arith.constant 0 : index
    %7 = vector.load %arg4[%c0_5, %c0_6] : memref<8x12xf32, #tpu.memory_space<vmem>>, vector<8x12xf32>
    %8 = vector.extract_strided_slice %7 {offsets = [0, 0], sizes = [8, 4], strides = [1, 1]} : vector<8x12xf32> to vector<8x4xf32>
    %cst = arith.constant dense<0.000000e+00> : vector<8x256xf32>
    %9 = tpu.matmul %8, %4, %cst {dimension_numbers = #tpu.dot_dimension_numbers<[1], [0], [0], [1], [0, 0, 1, 1], [], []>} : vector<8x4xf32>, vector<4x256xf32>, vector<8x256xf32> -> vector<8x256xf32>
    %10 = vector.extract_strided_slice %7 {offsets = [0, 4], sizes = [8, 4], strides = [1, 1]} : vector<8x12xf32> to vector<8x4xf32>
    %cst_7 = arith.constant dense<0.000000e+00> : vector<8x256xf32>
    %11 = tpu.matmul %10, %5, %cst_7 {dimension_numbers = #tpu.dot_dimension_numbers<[1], [0], [0], [1], [0, 0, 1, 1], [], []>} : vector<8x4xf32>, vector<4x256xf32>, vector<8x256xf32> -> vector<8x256xf32>
    %12 = arith.addf %9, %11 : vector<8x256xf32>
    %13 = vector.extract_strided_slice %7 {offsets = [0, 8], sizes = [8, 4], strides = [1, 1]} : vector<8x12xf32> to vector<8x4xf32>
    %cst_8 = arith.constant dense<0.000000e+00> : vector<8x256xf32>
    %14 = tpu.matmul %13, %6, %cst_8 {dimension_numbers = #tpu.dot_dimension_numbers<[1], [0], [0], [1], [0, 0, 1, 1], [], []>} : vector<8x4xf32>, vector<4x256xf32>, vector<8x256xf32> -> vector<8x256xf32>
    %15 = arith.addf %12, %14 : vector<8x256xf32>
    %c0_9 = arith.constant 0 : index
    %c0_10 = arith.constant 0 : index
    %16 = vector.load %arg5[%c0_9, %c0_10] : memref<8x1xf32, #tpu.memory_space<vmem>>, vector<8x1xf32>
    %17 = vector.broadcast %16 : vector<8x1xf32> to vector<8x256xf32>
    %18 = arith.addf %15, %17 : vector<8x256xf32>
    %cst_11 = arith.constant 2.000000e-01 : f32
    %19 = vector.broadcast %cst_11 : f32 to vector<8x256xf32>
    %20 = arith.mulf %19, %18 : vector<8x256xf32>
    %21 = arith.maximumf %18, %20 : vector<8x256xf32>
    %22 = arith.mulf %21, %21 : vector<8x256xf32>
    %cst_12 = arith.constant dense<0.000000e+00> : vector<256xf32>
    %23 = vector.multi_reduction <add>, %22, %cst_12 [0] : vector<8x256xf32> to vector<256xf32>
    %24 = vector.shape_cast %23 : vector<256xf32> to vector<1x256xf32>
    %cst_13 = arith.constant 8.000000e+00 : f32
    %25 = vector.broadcast %cst_13 : f32 to vector<1x256xf32>
    %26 = arith.divf %24, %25 : vector<1x256xf32>
    %cst_14 = arith.constant 9.99999993E-9 : f32
    %27 = vector.broadcast %cst_14 : f32 to vector<1x256xf32>
    %28 = arith.addf %26, %27 : vector<1x256xf32>
    %29 = math.rsqrt %28 : vector<1x256xf32>
    %30 = vector.broadcast %29 : vector<1x256xf32> to vector<8x256xf32>
    %31 = arith.mulf %21, %30 : vector<8x256xf32>
    %32 = tpu.iota {dimensions = array<i32: 1>} : vector<1x256xi32>
    %c128_i32 = arith.constant 128 : i32
    %33 = arith.muli %arg1, %c128_i32 : i32
    %c1_i32 = arith.constant 1 : i32
    %34 = arith.subi %33, %c1_i32 : i32
    %35 = vector.broadcast %34 : i32 to vector<1x256xi32>
    %36 = arith.addi %32, %35 : vector<1x256xi32>
    %c0_i32 = arith.constant 0 : i32
    %37 = vector.broadcast %c0_i32 : i32 to vector<1x256xi32>
    %38 = arith.cmpi sge, %36, %37 : vector<1x256xi32>
    %c16_i32 = arith.constant 16 : i32
    %39 = vector.broadcast %c16_i32 : i32 to vector<1x256xi32>
    %40 = arith.cmpi slt, %36, %39 : vector<1x256xi32>
    %41 = arith.andi %38, %40 : vector<1x256xi1>
    %cst_15 = arith.constant 0.000000e+00 : f32
    %42 = vector.shape_cast %41 : vector<1x256xi1> to vector<1x256xi1>
    %43 = vector.broadcast %42 : vector<1x256xi1> to vector<8x256xi1>
    %44 = vector.broadcast %cst_15 : f32 to vector<8x256xf32>
    %45 = arith.select %43, %31, %44 : vector<8x256xi1>, vector<8x256xf32>
    %c255_i32_16 = arith.constant 255 : i32
    %46 = tpu.dynamic_rotate %45 by %c255_i32_16 dim 1 : vector<8x256xf32>, i32 -> vector<8x256xf32>
    %c254_i32_17 = arith.constant 254 : i32
    %47 = tpu.dynamic_rotate %45 by %c254_i32_17 dim 1 : vector<8x256xf32>, i32 -> vector<8x256xf32>
    %c0_18 = arith.constant 0 : index
    %c0_19 = arith.constant 0 : index
    %48 = vector.load %arg6[%c0_18, %c0_19] : memref<8x24xf32, #tpu.memory_space<vmem>>, vector<8x24xf32>
    %49 = tpu.concatenate %45, %46, %47 in 0 : vector<8x256xf32>, vector<8x256xf32>, vector<8x256xf32> -> vector<24x256xf32>
    %cst_20 = arith.constant dense<0.000000e+00> : vector<8x256xf32>
    %50 = tpu.matmul %48, %49, %cst_20 {dimension_numbers = #tpu.dot_dimension_numbers<[1], [0], [0], [1], [0, 0, 1, 1], [], []>} : vector<8x24xf32>, vector<24x256xf32>, vector<8x256xf32> -> vector<8x256xf32>
    %c0_21 = arith.constant 0 : index
    %c0_22 = arith.constant 0 : index
    %51 = vector.load %arg7[%c0_21, %c0_22] : memref<8x1xf32, #tpu.memory_space<vmem>>, vector<8x1xf32>
    %52 = vector.broadcast %51 : vector<8x1xf32> to vector<8x256xf32>
    %53 = arith.addf %50, %52 : vector<8x256xf32>
    %cst_23 = arith.constant 2.000000e-01 : f32
    %54 = vector.broadcast %cst_23 : f32 to vector<8x256xf32>
    %55 = arith.mulf %54, %53 : vector<8x256xf32>
    %56 = arith.maximumf %53, %55 : vector<8x256xf32>
    %57 = arith.mulf %56, %56 : vector<8x256xf32>
    %cst_24 = arith.constant dense<0.000000e+00> : vector<256xf32>
    %58 = vector.multi_reduction <add>, %57, %cst_24 [0] : vector<8x256xf32> to vector<256xf32>
    %59 = vector.shape_cast %58 : vector<256xf32> to vector<1x256xf32>
    %cst_25 = arith.constant 8.000000e+00 : f32
    %60 = vector.broadcast %cst_25 : f32 to vector<1x256xf32>
    %61 = arith.divf %59, %60 : vector<1x256xf32>
    %cst_26 = arith.constant 9.99999993E-9 : f32
    %62 = vector.broadcast %cst_26 : f32 to vector<1x256xf32>
    %63 = arith.addf %61, %62 : vector<1x256xf32>
    %64 = math.rsqrt %63 : vector<1x256xf32>
    %65 = vector.broadcast %64 : vector<1x256xf32> to vector<8x256xf32>
    %66 = arith.mulf %56, %65 : vector<8x256xf32>
    %67 = vector.extract_strided_slice %66 {offsets = [0, 0], sizes = [8, 128], strides = [1, 1]} : vector<8x256xf32> to vector<8x128xf32>
    %c0_27 = arith.constant 0 : index
    %c0_28 = arith.constant 0 : index
    %c0_29 = arith.constant 0 : index
    %68 = vector.load %arg8[%c0_27, %c0_28, %c0_29] : memref<1x8x128xf32, #tpu.memory_space<vmem>>, vector<1x8x128xf32>
    %69 = vector.shape_cast %68 : vector<1x8x128xf32> to vector<8x128xf32>
    %70 = vector.shape_cast %67 : vector<8x128xf32> to vector<1x8x128xf32>
    tpu.vector_store %arg8[%c0_27, %c0_28, %c0_29], %70 {strides = array<i32>} : memref<1x8x128xf32, #tpu.memory_space<vmem>>, vector<1x8x128xf32>,
    return
  }
  func.func @transform_0(%arg0: i32, %arg1: i32) -> (i32, i32, i32) {
    %c0_i32 = arith.constant 0 : i32
    %c0_i32_0 = arith.constant 0 : i32
    return %arg0, %c0_i32, %arg1 : i32, i32, i32
  }
  func.func @transform_1(%arg0: i32, %arg1: i32) -> (i32, i32, i32) {
    %c1_i32 = arith.constant 1 : i32
    %0 = arith.addi %arg1, %c1_i32 : i32
    %c1_i32_0 = arith.constant 1 : i32
    %1 = arith.muli %0, %c1_i32_0 : i32
    %c0_i32 = arith.constant 0 : i32
    %c0_i32_1 = arith.constant 0 : i32
    return %arg0, %c0_i32, %1 : i32, i32, i32
  }
  func.func @transform_2(%arg0: i32, %arg1: i32) -> (i32, i32) {
    %c0_i32 = arith.constant 0 : i32
    %c0_i32_0 = arith.constant 0 : i32
    %c0_i32_1 = arith.constant 0 : i32
    return %c0_i32, %c0_i32_0 : i32, i32
  }
  func.func @transform_3(%arg0: i32, %arg1: i32) -> (i32, i32) {
    %c0_i32 = arith.constant 0 : i32
    %c0_i32_0 = arith.constant 0 : i32
    %c0_i32_1 = arith.constant 0 : i32
    return %c0_i32, %c0_i32_0 : i32, i32
  }
  func.func @transform_4(%arg0: i32, %arg1: i32) -> (i32, i32) {
    %c0_i32 = arith.constant 0 : i32
    %c0_i32_0 = arith.constant 0 : i32
    %c0_i32_1 = arith.constant 0 : i32
    return %c0_i32, %c0_i32_0 : i32, i32
  }
  func.func @transform_5(%arg0: i32, %arg1: i32) -> (i32, i32) {
    %c0_i32 = arith.constant 0 : i32
    %c0_i32_0 = arith.constant 0 : i32
    %c0_i32_1 = arith.constant 0 : i32
    return %c0_i32, %c0_i32_0 : i32, i32
  }
  func.func @transform_6(%arg0: i32, %arg1: i32) -> (i32, i32, i32) {
    %c0_i32 = arith.constant 0 : i32
    %c0_i32_0 = arith.constant 0 : i32
    return %arg0, %c0_i32, %arg1 : i32, i32, i32
  }
}

</mosaic_0001>

<bundles_post_ra>
// kernel: tpu_custom_call.1
= control target key start
LH: loop header
LB: loop body
LE: loop exit
PB: predicated region body
PF: predicated region fallthrough
CT: control target
= control target key end

     0   :  { %s1374_s0 = inlined_call_operand.vmem [shape: f32[2,4,256], index: 0, kind: input, shape index: {}]   ;;  %s1375_s1 = inlined_call_operand.hbm [shape: f32[2,4,256], index: 1, kind: input, shape index: {}]   ;;  %s1376_s2 = inlined_call_operand.hbm [shape: f32[8,12], index: 2, kind: input, shape index: {}]   ;;  %s1377_s3 = inlined_call_operand.vmem [shape: f32[8,1], index: 3, kind: input, shape index: {}]   ;;  %s1378_s4 = inlined_call_operand.hbm [shape: f32[8,24], index: 4, kind: input, shape index: {}]   ;;  %s1379_s5 = inlined_call_operand.vmem [shape: f32[8,1], index: 5, kind: input, shape index: {}]   ;;  %s1380_s6 = inlined_call_operand.hbm [shape: f32[2,8,128], index: 6, kind: output, shape index: {}]  }
   0x1   :  { %1382 = sst [smem:[#allocation13_spill]] %s1376_s2 }
   0x2   :  { %1383 = sst [smem:[#allocation14_spill]] %s1378_s4 }
   0x3   :  { %11 = vsyncpa [#allocation3], 0 }
   0x4   :  { %13 = vsyncpa [#allocation3 + $0x1], 0 }
   0x5   :  { %14 = vsyncpa [#allocation6], 0 }
   0x6   :  { %15 = vsyncpa [#allocation4], 0 }
   0x7   :  { %17 = vsyncpa [#allocation4 + $0x1], 0  ;;  %s1165_s21 = smov 0   ;;  %s1167_s22 = smov 0  }
   0x8   :  { %s1169_s23 = smov 0   ;;  %s1171_s24 = smov 0  }
   0x9   :  { %s1173_s25 = smov 0   ;;  %s1175_s26 = smov 0  }
   0xa LB: > { %s800_s27 = sadd.s32 4294967295, %s1120_s26   ;;  %s801_s28 = sadd.s32 4294967294, %s1120_s26   ;;  %s1120_s26 = sphi %s1175_s26, %s23_s26   ;;  %s1116_s25 = sphi %s1173_s25, %s1401_s25   ;;  %s1112_s24 = sphi %s1171_s24, %s1400_s24   ;;  %s1108_s23 = sphi %s1169_s23, %s1399_s23   ;;  %s1104_s22 = sphi %s1167_s22, %s1398_s22   ;;  %s1100_s21 = sphi %s1165_s21, %s1397_s21  }
   0xb   : > { %p87_p0 = scmp.ne.s32.totalorder %s1104_s22, %s1100_s21  ;;  %p1199_p1 = scmp.eq.s32.totalorder %s800_s27, 0 }
   0xc   : > { %p1203_p2 = scmp.eq.s32.totalorder %s800_s27, 1  ;;  %p203_p3 = scmp.eq.s32.totalorder %s801_s28, 1 }
   0xd   : > { %p1209_p4 = por %p1199_p1, %p87_p0  ;;  %p802_p5 = scmp.ge.s32.totalorder %s1120_s26, 1 }
   0xe   : > { %p1214_p6 = por %p203_p3, %p87_p0  ;;  %p210_p7 = scmp.lt.s32.totalorder %s1120_s26, 3 }
   0xf   : > { %s1388_s2 = sld [smem:[#allocation13_spill]]  ;;  %p805_p9 = scmp.ge.s32.totalorder %s1120_s26, 2 }
  0x10   : > { %p1222_p8 = pnand %p802_p5, %p210_p7  ;;  %s1122_s13 = smov [#allocation5]  }
  0x11   : > { %s224_s14 = sshll.u32 %s1122_s13, 4  ;;  %s1390_s4 = sld [smem:[#allocation14_spill]]  ;;  %s225_s14 = int_to_ptr.vmem [resolvable:$true] %s224_s14 }
  0x12   : > { %p848_p10 = pneg %p1222_p8  ;;  %s1123_s18 = smov [#allocation7]  }
  0x13   : > { %s239_s19 = sshll.u32 %s1123_s18, 4  ;;  %s35_s20 = sadd.s32 1, %s1116_s25  ;;  %s240_s19 = int_to_ptr.vmem [resolvable:$true] %s239_s19 }
  0x14   : > { %p849_p11 = pnand %p848_p10, %p1199_p1  ;;  %s74_s27 = sadd.s32 1, %s1108_s23 }
  0x15   : > { %s222_s11 = sshll.u32 %s1388_s2, 4  ;;  %p37_p12 = scmp.ge.s32.totalorder %s35_s20, 2  ;;  %s223_s11 = int_to_ptr.hbm [resolvable:$true] %s222_s11 }
  0x16   : > { %851 = dma.hbm_to_vmem [thread:$0]  (!%p849_p11), %s223_s11, 128, %s225_s14, [#allocation6]  }
  0x17   : > { %s237_s17 = sshll.u32 %s1390_s4, 4  ;;  %p81_p13 = scmp.ne.s32.totalorder %s1108_s23, %s1104_s22  ;;  %s238_s17 = int_to_ptr.hbm [resolvable:$true] %s237_s17 }
  0x18   : > { %854 = dma.hbm_to_vmem [thread:$0]  (!%p849_p11), %s238_s17, 128, %s240_s19, [#allocation6]  }
  0x19   : > { %p82_p0 = scmp.eq.s32.totalorder %s1120_s26, 0  ;;  %p865_p3 = scmp.lt.s32.totalorder %s1120_s26, 2 }
  0x1a   : > { %s1403_s20 = smov (%p37_p12, %s35_s20), 0  ;;  %p1248_p7 = por %p1203_p2, %p81_p13 }
  0x1b   : > { %1391 = sst [smem:[#allocation12_spill]] %s1403_s20  ;;  %p1242_p5 = por %p82_p0, %p81_p13 }
  0x1c   : > { %s69_s10 = ssub.s32 %s1116_s25, %s1403_s20  ;;  %s264_s11 = sand.u32 1, %s1108_s23  }
  0x1d   : > { %p72_p10 = scmp.eq.s32.totalorder %s69_s10, 0  ;;  %s806_s13 = sshll.u32 %s264_s11, 2 }
  0x1e   : > { %s834_s14 = sshll.u32 %s1116_s25, 3  ;;  %s268_s2 = scalar_lea.vmem [#allocation2], %s806_s13 }
  0x1f   : > { %s1257_s15 = scalar_select %p72_p10, %s1108_s23, %s74_s27  }
  0x20   : > { %s716_s18 = scalar_lea.hbm %s1375_s1, %s834_s14  ;;  %s279_s4 = sshll.u32 %s268_s2, 4  ;;  %s280_s4 = int_to_ptr.vmem [resolvable:$true] %s279_s4 }
  0x21   : > { %s717_s19 = scalar_lea.hbm %s716_s18, 4  ;;  %p856_p2 = pnand %p865_p3, %p1242_p5 }
  0x22   : > { %s277_s30 = sshll.u32 %s717_s19, 4  ;;  %s265_s20 = scalar_lea.sflag [#allocation3], %s264_s11  ;;  %s278_s30 = int_to_ptr.hbm [resolvable:$true] %s277_s30 }
  0x23   : > { %858 = dma.hbm_to_vmem [thread:$0]  (!%p856_p2), %s278_s30, 64, %s280_s4, %s265_s20  }
  0x24   : > { %288 = sbr.rel (%p1222_p8) target bundleno = 661 (0x295), region = 44  ;;  %s1269_s27 = sand.u32 (!%p1222_p8), 1, %s1104_s22  }
  0x25   : > { %s810_s10 = sshll.u32 (!%p1222_p8), %s1269_s27, 2  ;;  %s291_s13 = scalar_lea.sflag (!%p1222_p8), [#allocation3], %s1269_s27 }
  0x26   : > { %s294_s2 = scalar_lea.vmem (!%p1222_p8), [#allocation2], %s810_s10 }
  0x29   : > { %1087 = dma.done.wait (%p1209_p4), %s291_s13, 64  }
  0x2a   : > { %1089 = vsyncadd (%p1209_p4), %s291_s13, 4294967232 }
  0x2b   : > { %1091 = dma.done.wait (%p1199_p1), [#allocation6], 256  }
  0x2c   : > { %1093 = vsyncadd (%p1199_p1), [#allocation6], 4294967040  ;;  %p342_p8 = scmp.lt.s32.totalorder %s1112_s24, 1  ;;  %v369_v1 = vld [vmem:[#allocation5] sm:$0xff]  ;;  %s1124_s14 = smov 127   ;;  %vm376_vm0 = vcmask 1043456   ;;  %v357_v5 = vlaneseq }
  0x2d   : > { %s1125_s7 = smov 124   ;;  %v352_v2 = vld [vmem:[%s294_s2] sm:$0xf]  ;;  %s1126_s16 = smov 126   ;;  %vm373_vm1 = vcmask 31744   ;;  %v1128_v4 = vmov 0  }
  0x2e   : > { %s343_s4 = scalar_select %p342_p8, %s1112_s24, 1  ;;  %371 = vrot.lane.b32.xlu1 %v369_v1, %s1125_s7  ;;  %364 = vrot.lane.b32.xlu2 %v352_v2, %s1126_s16  ;;  %v523_v3 = vld [vmem:[%s1377_s3] sm:$0xff]  ;;  %v1297_v8 = vand.u32 127, %v357_v5  ;;  %v1129_v20 = vmov 8.0   ;;  %vm617_vm11 = vcmask 195584  }
  0x2f   : > { %s1127_s29 = smov 120   ;;  %822 = vmatpush.msk.msra.mxu3 %vm376_vm0, %v352_v2  ;;  %926 = vset.pattern.permute.xlu0 %v1128_v4  ;;  %938 = vrcp.f32 %v1129_v20  ;;  %v611_v57 = vld [vmem:[%s1379_s5] sm:$0xff]  ;;  %s813_s10 = sshll.u32 %s1269_s27, 3 }
  0x30   : > { %s835_s12 = sshll.u32 %s343_s4, 3  ;;  %823 = vmatmul.msk.f32.vlgmr.msra.gmra.mxu3 %vm373_vm1, %v369_v1  ;;  %937 = vset.pattern.permute.xlu1 %v1128_v4  ;;  %vm359_vm2 = vcmp.lt.s32.totalorder %v1297_v8, 127  ;;  %vm366_vm3 = vcmp.lt.s32.totalorder %v1297_v8, 126  ;;  %v586_v48 = vadd.s32 4294967295, %v1297_v8  ;;  %s831_s13 = sshll.u32 %s1112_s24, 3 }
  0x31   : > { %s349_s11 = scalar_lea.vmem %s1374_s0, %s835_s12  ;;  %s676_s12 = scalar_lea.hbm %s1380_s6, %s831_s13 }
  0x32   : > { %v351_v0 = vld [vmem:[%s349_s11] sm:$0xf]  ;;  %vm588_vm6 = vcmp.ge.s32.totalorder %v586_v48, 0  ;;  %vm590_vm7 = vcmp.lt.s32.totalorder %v586_v48, 16  ;;  %s341_s20 = scalar_lea.vmem [#allocation8], %s813_s10  ;;  %s680_s11 = sshll.u32 %s676_s12, 4  ;;  %s681_s11 = int_to_ptr.hbm [resolvable:$true] %s680_s11 }
  0x33   : > { %353 = vrot.lane.b32.xlu0 %v351_v0, %s1124_s14  ;;  %820 = vmatpush.msk.msra.mxu2 %vm376_vm0, %v351_v0  ;;  %vm1318_vm10 = vmand %vm588_vm6, %vm590_vm7  ;;  %s678_s28 = sshll.u32 %s341_s20, 4  ;;  %s665_s24 = scalar_lea.sflag [#allocation4], %s1269_s27  ;;  %s679_s28 = int_to_ptr.vmem [resolvable:$true] %s678_s28 }
  0x34   : > { %821 = vmatmul.msk.f32.vlgmr.msra.gmra.mxu2 %vm373_vm1, %v369_v1  ;;  %s1054_s17 = scalar_lea.hbm %s1380_s6, 16 }
  0x35   : > { %v939_v26 = vpop.eup %938 }
  0x36   : > { %362 = vrot.lane.b32.xlu1 %v351_v0, %s1126_s16  ;;  %471 = vrot.lane.b32.xlu2 %v369_v1, %s1127_s29  ;;  %v550_v29 = vmul.f32 8.0, %v939_v26  ;;  %vm554_vm4 = vweird.f32 %v939_v26 }
  0x38   : > { %v551_v32 = vsub.f32 1.0, %v550_v29 }
  0x3a   : > { %v552_v35 = vmul.f32 %v939_v26, %v551_v32 }
  0x3b   : > { %355 = vrot.lane.b32.xlu0 %v352_v2, %s1124_s14  ;;  %v610_v2 = vld [vmem:[#allocation7] sm:$0xff] }
  0x3c   : > { %v553_v38 = vadd.f32 %v939_v26, %v552_v35 }
  0x3e   : > { %v555_v41 = vsel %vm554_vm4, %v939_v26, %v553_v38 }
  0x43   : > { %526 = vperm.xlu0 %926, %v523_v3  }
  0x88   : > { %v365_v9 = vpop.permute.xlu2 %364 }
  0x90   : > { %v472_v16 = vpop.permute.xlu2 %471 }
  0xa0   : > { %v372_v7 = vpop.permute.xlu1 %371 }
  0xa5   : > { %v354_v6 = vpop.permute.xlu0 %353 }
  0xa8   : > { %v363_v11 = vpop.permute.xlu1 %362 }
  0xa9   : > { %v367_v14 = vsel %vm366_vm3, %v363_v11, %v365_v9  ;;  %v368_v15 = vsel %vm366_vm3, %v365_v9, %v363_v11 }
  0xad   : > { %v356_v10 = vpop.permute.xlu0 %355 }
  0xae   : > { %v360_v12 = vsel %vm359_vm2, %v354_v6, %v356_v10  ;;  %v361_v13 = vsel %vm359_vm2, %v356_v10, %v354_v6 }
  0xaf   : > { %816 = vmatpush.msk.msra.mxu0 %vm376_vm0, %v360_v12  ;;  %818 = vmatpush.msk.msra.mxu1 %vm376_vm0, %v361_v13 }
  0xb0   : > { %817 = vmatmul.msk.f32.vlgmr.msra.gmra.mxu0 %vm373_vm1, %v372_v7  ;;  %819 = vmatmul.msk.f32.vlgmr.msra.gmra.mxu1 %vm373_vm1, %v372_v7 }
  0xb1   : > { %824 = vmatpush.msk.msrb.mxu0 %vm376_vm0, %v367_v14  ;;  %826 = vmatpush.msk.msrb.mxu1 %vm376_vm0, %v368_v15 }
  0xb3   : > { %v468_v17 = vpop.f32.mrf.mxu3 }
  0xb5   : > { %v527_v23 = vpop.permute.xlu0 %526 }
  0xb7   : > { %v448_v21 = vpop.f32.mrf.mxu2 }
  0xb8   : > { %825 = vmatmul.msk.f32.vlgmr.msrb.gmra.mxu0 %vm373_vm1, %v472_v16  ;;  %827 = vmatmul.msk.f32.vlgmr.msrb.gmra.mxu1 %vm373_vm1, %v472_v16 }
 0x12d   : > { %v400_v18 = vpop.f32.mrf.mxu0  ;;  %v420_v19 = vpop.f32.mrf.mxu1 }
 0x12e   : > { %v449_v22 = vadd.f32 %v448_v21, %v400_v18 }
 0x135   : > { %v498_v24 = vpop.f32.mrf.mxu0  ;;  %v518_v25 = vpop.f32.mrf.mxu1 }
 0x136   : > { %v521_v27 = vadd.f32 %v498_v24, %v449_v22 }
 0x138   : > { %v529_v28 = vadd.f32 %v527_v23, %v521_v27 }
 0x13a   : > { %v531_v30 = vmul.f32 0.2, %v529_v28 }
 0x13c   : > { %v533_v31 = vmax.f32 %v529_v28, %v531_v30 }
 0x13e   : > { %v535_v33 = vmul.f32 %v533_v31, %v533_v31 }
 0x140   : > { %v537_v34 = vrot.slane %v535_v33, 4 }
 0x142   : > { %v538_v36 = vadd.f32 %v537_v34, %v535_v33 }
 0x144   : > { %v539_v37 = vrot.slane %v538_v36, 2 }
 0x146   : > { %v540_v39 = vadd.f32 %v539_v37, %v538_v36 }
 0x148   : > { %v541_v40 = vrot.slane %v540_v39, 1 }
 0x14a   : > { %v542_v42 = vadd.f32 %v541_v40, %v540_v39 }
 0x14c   : > { %v556_v43 = vmul.f32 %v555_v41, %v542_v42 }
 0x14e   : > { %v558_v44 = vadd.f32 1e-08, %v556_v43 }
 0x150   : > { %940 = vrsqrt.f32 %v558_v44  ;;  %vm566_vm8 = vweird.f32 %v558_v44 }
 0x156   : > { %v941_v45 = vpop.eup %940 }
 0x157   : > { %v561_v46 = vmul.f32 %v941_v45, %v558_v44  ;;  %vm567_vm5 = vweird.f32 %v941_v45 }
 0x158   : > { %vm568_vm9 = vmor %vm566_vm8, %vm567_vm5 }
 0x159   : > { %v562_v47 = vmul.f32 %v941_v45, %v561_v46 }
 0x15b   : > { %v563_v49 = vmul.f32 0.5, %v562_v47 }
 0x15d   : > { %v564_v50 = vsub.f32 1.5, %v563_v49 }
 0x15f   : > { %v565_v51 = vmul.f32 %v941_v45, %v564_v50 }
 0x161   : > { %v569_v52 = vsel %vm568_vm9, %v941_v45, %v565_v51 }
 0x162   : > { %v580_v54 = vmul.f32 %v569_v52, %v533_v31 }
 0x164   : > { %v598_v55 = vsel %vm1318_vm10, %v580_v54, 0.0 }
 0x165   : > { %v932_v56 = vpack.i.bf16 0.0, %v598_v55 }
 0x167   : > { %933 = vrot.lane.b32.xlu2 %v932_v56, %s1124_s14  ;;  %928 = vrot.lane.b32.xlu1 %v932_v56, %s1126_s16  ;;  %s1048_s14 = sshra.s32 %s681_s11, 4  ;;  %s1049_s14 = int_to_ptr.hbm [resolvable:$true] %s1048_s14 }
 0x168   : > { %s1050_s7 = scalar_lea.hbm %s1049_s14, 8  ;;  %p1055_p12 = scmp.lt.s32.totalorder %s1049_s14, %s1380_s6 }
 0x169   : > { %p1051_p1 = scmp.ne.s32.totalorder %s1049_s14, %s1050_s7  ;;  %p1056_p13 = scmp.lt.s32.totalorder %s1054_s17, %s1050_s7 }
 0x16b   : > { %p1052_p4 = pnand %p1051_p1, %p1248_p7  ;;  %p1057_p0 = por %p1056_p13, %p1055_p12 }
 0x16d   : > { %p1053_p11 = pneg %p1052_p4 }
 0x16f   : > { %614 = vperm.xlu1 %937, %v611_v57   ;;  %p1058_p3 = pnand %p1057_p0, %p1053_p11 }
 0x1c1   : > { %v934_v58 = vpop.permute.xlu2 %933 }
 0x1c2   : > { %v936_v60 = vunpack.i.h.bf16 %v934_v58  ;;  %v935_v61 = vunpack.i.l.bf16 %v934_v58 }
 0x1c4   : > { %v604_v1 = vsel %vm359_vm2, %v935_v61, %v936_v60 }
 0x1d9   : > { %v929_v59 = vpop.permute.xlu1 %928 }
 0x1da   : > { %v931_v62 = vunpack.i.h.bf16 %v929_v59  ;;  %v930_v63 = vunpack.i.l.bf16 %v929_v59 }
 0x1dc   : > { %v609_v0 = vsel %vm366_vm3, %v930_v63, %v931_v62 }
 0x1dd   : > { %634 = vmatpush.msrb.mxu2 %v609_v0 }
 0x1df   : > { %635 = vmatpush.msrb.mxu2 %v604_v1 }
 0x1e1   : > { %828 = vmatpush.msk.msrb.mxu2 %vm1318_vm10, %v580_v54  ;;  %v615_v3 = vpop.permute.xlu1 %614 }
 0x1e2   : > { %829 = vmatmul.msk.f32.vlgmr.msrb.gmra.mxu2 %vm617_vm11, %v610_v2 }
 0x265   : > { %v638_v4 = vpop.f32.mrf.mxu2 }
 0x266   : > { %v639_v5 = vadd.f32 %v638_v4, %v615_v3 }
 0x268   : > { %v641_v6 = vmul.f32 0.2, %v639_v5 }
 0x26a   : > { %v642_v7 = vmax.f32 %v639_v5, %v641_v6 }
 0x26c   : > { %v643_v9 = vmul.f32 %v642_v7, %v642_v7 }
 0x26e   : > { %v644_v10 = vrot.slane %v643_v9, 4 }
 0x270   : > { %v645_v11 = vadd.f32 %v644_v10, %v643_v9 }
 0x272   : > { %v646_v12 = vrot.slane %v645_v11, 2 }
 0x274   : > { %v647_v8 = vadd.f32 %v646_v12, %v645_v11 }
 0x276   : > { %v648_v13 = vrot.slane %v647_v8, 1 }
 0x278   : > { %v649_v14 = vadd.f32 %v648_v13, %v647_v8 }
 0x27a   : > { %v650_v15 = vmul.f32 %v649_v14, %v555_v41 }
 0x27c   : > { %v651_v16 = vadd.f32 1e-08, %v650_v15 }
 0x27e   : > { %942 = vrsqrt.f32 %v651_v16  ;;  %vm658_vm13 = vweird.f32 %v651_v16 }
 0x284   : > { %v943_v17 = vpop.eup %942 }
 0x285   : > { %v653_v18 = vmul.f32 %v943_v17, %v651_v16  ;;  %vm659_vm12 = vweird.f32 %v943_v17 }
 0x286   : > { %vm660_vm14 = vmor %vm658_vm13, %vm659_vm12 }
 0x287   : > { %v654_v19 = vmul.f32 %v943_v17, %v653_v18 }
 0x289   : > { %v655_v20 = vmul.f32 0.5, %v654_v19 }
 0x28b   : > { %v656_v21 = vsub.f32 1.5, %v655_v20 }
 0x28d   : > { %v657_v22 = vmul.f32 %v943_v17, %v656_v21 }
 0x28f   : > { %v661_v23 = vsel %vm660_vm14, %v943_v17, %v657_v22 }
 0x290   : > { %v662_v24 = vmul.f32 %v661_v23, %v642_v7 }
 0x292   : > { %663 = vst [vmem:[%s341_s20] sm:$0xff] %v662_v24 }
 0x293   : > { %1061 = shalt.err (!%p1058_p3)
}
 0x294   : > { %846 = dma.vmem_to_hbm [thread:$0]  (%p1248_p7), %s679_s28, 128, %s681_s11, %s665_s24  }
 0x295 PF: > { %s692_s27 = sand.u32 1, %s1100_s21   ;;  %p860_p5 = pnand %p805_p9, %p1214_p6 }
 0x296   : > { %s693_s30 = scalar_lea.sflag [#allocation4], %s692_s27 }
 0x297   : > { %p861_p10 = pneg %p860_p5 }
 0x299   : > { %1095 = dma.done.wait (%p861_p10), %s693_s30, 128  }
 0x29a   : > { %1097 = vsyncadd (%p861_p10), %s693_s30, 4294967168  ;;  %s23_s26 = sadd.s32 1, %s1120_s26   ;;  %s1396_s9 = sld [smem:[#allocation12_spill]] }
 0x29b   : > { %p20_p2 = scmp.ge.s32.totalorder %s23_s26, 4   ;;  %s1397_s21 = smov %s1104_s22 }
 0x29c   : > { %s1398_s22 = smov %s1108_s23  ;;  %s1399_s23 = smov %s1257_s15 }
 0x29d   : > { %s1400_s24 = smov %s1116_s25  ;;  %22 = sbr.rel (!%p20_p2) target bundleno = 10 (0xa), region = 100 }
 0x2a0   : > { %s1401_s25 = smov %s1396_s9 }
 0x2a2   :  { %699 = vsyncpa [#allocation3], 1 }
 0x2a3   :  { %701 = vsyncpa [#allocation3 + $0x1], 1 }
 0x2a4   :  { %702 = vsyncpa [#allocation6], 1 }
 0x2a5   :  { %703 = vsyncpa [#allocation4], 1 }
 0x2a6   :  { %705 = vsyncpa [#allocation4 + $0x1], 1 }

</bundles_post_ra>
